<compile_context>
chip_gen: v5e
topology: v5e:2x2
jax: 0.10.0
libtpu: 0.0.40
codegen_flags: <defaults>
</compile_context>

<pallas_src>
import jax
import jax.numpy as jnp
from jax.experimental import pallas as pl
from jax.experimental.pallas import tpu as pltpu

# ----- problem sizes (small, consistent with the module's constructor) -----
B = 16                  # batch
S_DIM = 6               # s_dim
A_DIM = 2               # a_dim
C_DIM = 2               # non-actionable prefix of s
K_DIM = S_DIM - C_DIM   # actionable tail (= nout of each regressor)
NIN = A_DIM + S_DIM     # input to both regressors (nin)
NL = 2                  # hidden layers (nl)
NH = 32                 # hidden width (nh)
NH2 = 2 * NH            # fused hidden width (loc || scl)

# packed-weight blob row layout (all row starts 8-aligned)
ROW_W1A = 0             # rows [0, 8):    W1_a fused (A_DIM real rows, zero-padded)
ROW_W1S = 8             # rows [8, 16):   W1_s fused (S_DIM real rows, zero-padded)
ROW_B = 16              # rows [16, 24):  row 16 = b1, row 17 = b2, row 18 = b3
ROW_W2 = 24             # rows [24, 88):  W2_fused block_diag (64, 64)
ROW_W3 = ROW_W2 + NH2   # rows [88, 152): W3_fused block_diag, zero-padded cols
N_ROWS = ROW_W3 + NH2   # 152


def scm_kernel(s_ref, a_ref, u_ref, w_ref, out_ref):
    """Fused location+scale MLPs, softplus on scale half, writes full s' directly."""
    s = s_ref[...]                                    # (B, S_DIM) f32
    a = a_ref[...]                                    # (B, A_DIM) f32

    w1a = w_ref[ROW_W1A:ROW_W1A + A_DIM, :]           # (A_DIM, 2*NH)
    w1s = w_ref[ROW_W1S:ROW_W1S + S_DIM, :]           # (S_DIM, 2*NH)
    b1 = w_ref[ROW_B + 0:ROW_B + 1, :]                # (1, 2*NH)
    b2 = w_ref[ROW_B + 1:ROW_B + 2, :]
    b3 = w_ref[ROW_B + 2:ROW_B + 3, :]
    w2 = w_ref[ROW_W2:ROW_W2 + NH2, :]                # (2*NH, 2*NH) block-diag
    w3 = w_ref[ROW_W3:ROW_W3 + NH2, :]                # (2*NH, 2*NH) block-diag, 0-padded

    # layer 1: x = cat([a, s]) folded into a split dot (no lane concat needed)
    h = (jnp.dot(a, w1a, preferred_element_type=jnp.float32)
         + jnp.dot(s, w1s, preferred_element_type=jnp.float32))
    h = jnp.tanh(h + b1)                                                     # (B, 64)
    h = jnp.tanh(jnp.dot(h, w2, preferred_element_type=jnp.float32) + b2)    # (B, 64)
    y = jnp.dot(h, w3, preferred_element_type=jnp.float32) + b3              # (B, 64)

    loc = y[:, 0:K_DIM]                               # location regressor output
    scl = jax.nn.softplus(y[:, K_DIM:2 * K_DIM])      # scale regressor (positive=True)
    tail = scl * u_ref[...] + loc                     # (B, K_DIM)

    # assemble s' in-kernel (two static partial-lane stores covering the whole block)
    out_ref[:, 0:C_DIM] = s[:, 0:C_DIM]
    out_ref[:, C_DIM:S_DIM] = tail.astype(out_ref.dtype)


def pack_params(p):
    """Fuse loc/scale MLPs (pre-transposed weights) and pack into one (152, 64) blob.

    Call once per parameter set (hoisted out of the per-step forward path)."""
    w1 = jnp.concatenate([p["loc_W1"].T, p["scl_W1"].T], axis=1)             # (NIN, 64)
    w1a = jnp.zeros((8, NH2), jnp.float32).at[:A_DIM].set(w1[:A_DIM])
    w1s = jnp.zeros((8, NH2), jnp.float32).at[:S_DIM].set(w1[A_DIM:])

    bias = jnp.zeros((8, NH2), jnp.float32)
    bias = bias.at[0, :NH].set(p["loc_b1"][0]).at[0, NH:].set(p["scl_b1"][0])
    bias = bias.at[1, :NH].set(p["loc_b2"][0]).at[1, NH:].set(p["scl_b2"][0])
    bias = bias.at[2, :K_DIM].set(p["loc_b3"][0]).at[2, K_DIM:2 * K_DIM].set(p["scl_b3"][0])

    w2 = jnp.zeros((NH2, NH2), jnp.float32)
    w2 = w2.at[:NH, :NH].set(p["loc_W2"].T).at[NH:, NH:].set(p["scl_W2"].T)

    w3 = jnp.zeros((NH2, NH2), jnp.float32)
    w3 = w3.at[:NH, :K_DIM].set(p["loc_W3"].T)
    w3 = w3.at[NH:, K_DIM:2 * K_DIM].set(p["scl_W3"].T)

    return jnp.concatenate([w1a, w1s, bias, w2, w3], axis=0)                 # (152, 64)


def scm_forward(s, a, u, blob):
    """Single pallas_call producing the full s'; no XLA glue ops in the hot path."""
    return pl.pallas_call(
        scm_kernel,
        out_shape=jax.ShapeDtypeStruct((B, S_DIM), jnp.float32),
        grid=(1,),                                    # single step: whole batch at once
        in_specs=[
            pl.BlockSpec((B, S_DIM), lambda i: (0, 0)),
            pl.BlockSpec((B, A_DIM), lambda i: (0, 0)),
            pl.BlockSpec((B, K_DIM), lambda i: (0, 0)),
            pl.BlockSpec((N_ROWS, NH2), lambda i: (0, 0)),
        ],
        out_specs=pl.BlockSpec((B, S_DIM), lambda i: (0, 0)),
        compiler_params=pltpu.CompilerParams(
            dimension_semantics=("arbitrary",)),
    )(s, a, u, blob)


def init_linear(key, fan_in, fan_out):
    """Deterministic PyTorch-style init: U(-1/sqrt(fan_in), 1/sqrt(fan_in))."""
    kw, kb = jax.random.split(key)
    bound = 1.0 / jnp.sqrt(fan_in)
    w = jax.random.uniform(kw, (fan_out, fan_in), jnp.float32, -bound, bound)
    b = jax.random.uniform(kb, (1, fan_out), jnp.float32, -bound, bound)
    return w, b


def init_params(key):
    keys = jax.random.split(key, 6)
    p = {}
    p["loc_W1"], p["loc_b1"] = init_linear(keys[0], NIN, NH)
    p["loc_W2"], p["loc_b2"] = init_linear(keys[1], NH, NH)
    p["loc_W3"], p["loc_b3"] = init_linear(keys[2], NH, K_DIM)
    p["scl_W1"], p["scl_b1"] = init_linear(keys[3], NIN, NH)
    p["scl_W2"], p["scl_b2"] = init_linear(keys[4], NH, NH)
    p["scl_W3"], p["scl_b3"] = init_linear(keys[5], NH, K_DIM)
    return p


def scm_forward_ref(s, a, u, p):
    """Plain-JAX reference mirroring the PyTorch forward, for validation."""
    x = jnp.concatenate([a, s], axis=1)

    def mlp(x, w1, b1, w2, b2, w3, b3):
        h = jnp.tanh(x @ w1.T + b1)
        h = jnp.tanh(h @ w2.T + b2)
        return h @ w3.T + b3

    loc = mlp(x, p["loc_W1"], p["loc_b1"], p["loc_W2"], p["loc_b2"], p["loc_W3"], p["loc_b3"])
    scl = jax.nn.softplus(
        mlp(x, p["scl_W1"], p["scl_b1"], p["scl_W2"], p["scl_b2"], p["scl_W3"], p["scl_b3"]))
    s_prime = jnp.zeros_like(s)
    s_prime = s_prime.at[:, :C_DIM].set(s[:, :C_DIM])
    s_prime = s_prime.at[:, C_DIM:].set(scl * u + loc)
    return s_prime


if __name__ == "__main__":
    key = jax.random.PRNGKey(0)
    kp, ks, ka, ku = jax.random.split(key, 4)

    params = init_params(kp)
    s = jax.random.normal(ks, (B, S_DIM), jnp.float32)
    a = jax.random.normal(ka, (B, A_DIM), jnp.float32)
    u = jax.random.normal(ku, (B, K_DIM), jnp.float32)

    blob = jax.block_until_ready(pack_params(params))   # packed once, reused per call

    forward = jax.jit(scm_forward)
    out = forward(s, a, u, blob)
    out = jax.block_until_ready(out)

    ref = scm_forward_ref(s, a, u, params)
    assert out.shape == (B, S_DIM) and out.dtype == jnp.float32
    assert jnp.allclose(out, ref, atol=1e-5, rtol=1e-5), "kernel mismatch vs reference"

    print("KERNEL_OK")
</pallas_src>

<mosaic_0001>
module attributes {stable_mosaic.version = 11 : i64} {
  func.func @scm_kernel(%arg0: i32, %arg1: memref<16x6xf32, #tpu.memory_space<vmem>>, %arg2: memref<16x2xf32, #tpu.memory_space<vmem>>, %arg3: memref<16x4xf32, #tpu.memory_space<vmem>>, %arg4: memref<152x64xf32, #tpu.memory_space<vmem>>, %arg5: memref<16x6xf32, #tpu.memory_space<vmem>>) attributes {dimension_semantics = [#tpu.dimension_semantics<arbitrary>], iteration_bounds = array<i64: 1>, scalar_prefetch = 0 : i64, scratch_operands = 0 : i64, tpu.core_type = #tpu.core_type<tc>, window_params = [{pipeline_mode = #tpu.pipeline_mode<synchronous>, transform_indices = @transform_0, window_bounds = array<i64: 16, 6>}, {pipeline_mode = #tpu.pipeline_mode<synchronous>, transform_indices = @transform_1, window_bounds = array<i64: 16, 2>}, {pipeline_mode = #tpu.pipeline_mode<synchronous>, transform_indices = @transform_2, window_bounds = array<i64: 16, 4>}, {pipeline_mode = #tpu.pipeline_mode<synchronous>, transform_indices = @transform_3, window_bounds = array<i64: 152, 64>}, {pipeline_mode = #tpu.pipeline_mode<synchronous>, transform_indices = @transform_4, window_bounds = array<i64: 16, 6>}]} {
    %c0 = arith.constant 0 : index
    %c0_0 = arith.constant 0 : index
    %0 = vector.load %arg1[%c0, %c0_0] : memref<16x6xf32, #tpu.memory_space<vmem>>, vector<16x6xf32>
    %c0_1 = arith.constant 0 : index
    %c0_2 = arith.constant 0 : index
    %1 = vector.load %arg2[%c0_1, %c0_2] : memref<16x2xf32, #tpu.memory_space<vmem>>, vector<16x2xf32>
    %c0_3 = arith.constant 0 : index
    %c0_4 = arith.constant 0 : index
    %2 = vector.load %arg4[%c0_3, %c0_4] : memref<152x64xf32, #tpu.memory_space<vmem>>, vector<2x64xf32>
    %c8 = arith.constant 8 : index
    %c0_5 = arith.constant 0 : index
    %3 = vector.load %arg4[%c8, %c0_5] : memref<152x64xf32, #tpu.memory_space<vmem>>, vector<6x64xf32>
    %c16 = arith.constant 16 : index
    %c0_6 = arith.constant 0 : index
    %4 = vector.load %arg4[%c16, %c0_6] : memref<152x64xf32, #tpu.memory_space<vmem>>, vector<1x64xf32>
    %c17 = arith.constant 17 : index
    %c0_7 = arith.constant 0 : index
    %5 = vector.load %arg4[%c17, %c0_7] : memref<152x64xf32, #tpu.memory_space<vmem>>, vector<1x64xf32>
    %c18 = arith.constant 18 : index
    %c0_8 = arith.constant 0 : index
    %6 = vector.load %arg4[%c18, %c0_8] : memref<152x64xf32, #tpu.memory_space<vmem>>, vector<1x64xf32>
    %c24 = arith.constant 24 : index
    %c0_9 = arith.constant 0 : index
    %7 = vector.load %arg4[%c24, %c0_9] : memref<152x64xf32, #tpu.memory_space<vmem>>, vector<64x64xf32>
    %c88 = arith.constant 88 : index
    %c0_10 = arith.constant 0 : index
    %8 = vector.load %arg4[%c88, %c0_10] : memref<152x64xf32, #tpu.memory_space<vmem>>, vector<64x64xf32>
    %cst = arith.constant dense<0.000000e+00> : vector<16x64xf32>
    %9 = tpu.matmul %1, %2, %cst {dimension_numbers = #tpu.dot_dimension_numbers<[1], [0], [0], [1], [0, 0, 1, 1], [], []>} : vector<16x2xf32>, vector<2x64xf32>, vector<16x64xf32> -> vector<16x64xf32>
    %cst_11 = arith.constant dense<0.000000e+00> : vector<16x64xf32>
    %10 = tpu.matmul %0, %3, %cst_11 {dimension_numbers = #tpu.dot_dimension_numbers<[1], [0], [0], [1], [0, 0, 1, 1], [], []>} : vector<16x6xf32>, vector<6x64xf32>, vector<16x64xf32> -> vector<16x64xf32>
    %11 = arith.addf %9, %10 : vector<16x64xf32>
    %12 = vector.broadcast %4 : vector<1x64xf32> to vector<16x64xf32>
    %13 = arith.addf %11, %12 : vector<16x64xf32>
    %14 = math.tanh %13 : vector<16x64xf32>
    %cst_12 = arith.constant dense<0.000000e+00> : vector<16x64xf32>
    %15 = tpu.matmul %14, %7, %cst_12 {dimension_numbers = #tpu.dot_dimension_numbers<[1], [0], [0], [1], [0, 0, 1, 1], [], []>} : vector<16x64xf32>, vector<64x64xf32>, vector<16x64xf32> -> vector<16x64xf32>
    %16 = vector.broadcast %5 : vector<1x64xf32> to vector<16x64xf32>
    %17 = arith.addf %15, %16 : vector<16x64xf32>
    %18 = math.tanh %17 : vector<16x64xf32>
    %cst_13 = arith.constant dense<0.000000e+00> : vector<16x64xf32>
    %19 = tpu.matmul %18, %8, %cst_13 {dimension_numbers = #tpu.dot_dimension_numbers<[1], [0], [0], [1], [0, 0, 1, 1], [], []>} : vector<16x64xf32>, vector<64x64xf32>, vector<16x64xf32> -> vector<16x64xf32>
    %20 = vector.broadcast %6 : vector<1x64xf32> to vector<16x64xf32>
    %21 = arith.addf %19, %20 : vector<16x64xf32>
    %22 = vector.extract_strided_slice %21 {offsets = [0, 0], sizes = [16, 4], strides = [1, 1]} : vector<16x64xf32> to vector<16x4xf32>
    %23 = vector.extract_strided_slice %21 {offsets = [0, 4], sizes = [16, 4], strides = [1, 1]} : vector<16x64xf32> to vector<16x4xf32>
    %cst_14 = arith.constant 0.000000e+00 : f32
    %24 = vector.broadcast %cst_14 : f32 to vector<16x4xf32>
    %25 = arith.maximumf %23, %24 : vector<16x4xf32>
    %26 = vector.broadcast %cst_14 : f32 to vector<16x4xf32>
    %27 = arith.subf %23, %26 : vector<16x4xf32>
    %28 = arith.cmpf one, %27, %27 : vector<16x4xf32>
    %29 = vector.broadcast %cst_14 : f32 to vector<16x4xf32>
    %30 = arith.addf %23, %29 : vector<16x4xf32>
    %31 = math.absf %27 : vector<16x4xf32>
    %cst_15 = arith.constant 0.000000e+00 : f32
    %32 = vector.broadcast %cst_15 : f32 to vector<16x4xf32>
    %33 = arith.subf %32, %31 : vector<16x4xf32>
    %34 = math.exp %33 : vector<16x4xf32>
    %35 = math.log1p %34 : vector<16x4xf32>
    %36 = arith.addf %25, %35 : vector<16x4xf32>
    %37 = arith.select %28, %30, %36 : vector<16x4xi1>, vector<16x4xf32>
    %c0_16 = arith.constant 0 : index
    %c0_17 = arith.constant 0 : index
    %38 = vector.load %arg3[%c0_16, %c0_17] : memref<16x4xf32, #tpu.memory_space<vmem>>, vector<16x4xf32>
    %39 = arith.mulf %37, %38 : vector<16x4xf32>
    %40 = arith.addf %39, %22 : vector<16x4xf32>
    %41 = vector.extract_strided_slice %0 {offsets = [0, 0], sizes = [16, 2], strides = [1, 1]} : vector<16x6xf32> to vector<16x2xf32>
    %c0_18 = arith.constant 0 : index
    %c0_19 = arith.constant 0 : index
    %42 = vector.load %arg5[%c0_18, %c0_19] : memref<16x6xf32, #tpu.memory_space<vmem>>, vector<16x2xf32>
    tpu.vector_store %arg5[%c0_18, %c0_19], %41 {strides = array<i32>} : memref<16x6xf32, #tpu.memory_space<vmem>>, vector<16x2xf32>,
    %c0_20 = arith.constant 0 : index
    %c2 = arith.constant 2 : index
    %43 = vector.load %arg5[%c0_20, %c2] : memref<16x6xf32, #tpu.memory_space<vmem>>, vector<16x4xf32>
    tpu.vector_store %arg5[%c0_20, %c2], %40 {strides = array<i32>} : memref<16x6xf32, #tpu.memory_space<vmem>>, vector<16x4xf32>,
    return
  }
  func.func @transform_0(%arg0: i32) -> (i32, i32) {
    %c0_i32 = arith.constant 0 : i32
    %c0_i32_0 = arith.constant 0 : i32
    %c0_i32_1 = arith.constant 0 : i32
    return %c0_i32, %c0_i32_0 : i32, i32
  }
  func.func @transform_1(%arg0: i32) -> (i32, i32) {
    %c0_i32 = arith.constant 0 : i32
    %c0_i32_0 = arith.constant 0 : i32
    %c0_i32_1 = arith.constant 0 : i32
    return %c0_i32, %c0_i32_0 : i32, i32
  }
  func.func @transform_2(%arg0: i32) -> (i32, i32) {
    %c0_i32 = arith.constant 0 : i32
    %c0_i32_0 = arith.constant 0 : i32
    %c0_i32_1 = arith.constant 0 : i32
    return %c0_i32, %c0_i32_0 : i32, i32
  }
  func.func @transform_3(%arg0: i32) -> (i32, i32) {
    %c0_i32 = arith.constant 0 : i32
    %c0_i32_0 = arith.constant 0 : i32
    %c0_i32_1 = arith.constant 0 : i32
    return %c0_i32, %c0_i32_0 : i32, i32
  }
  func.func @transform_4(%arg0: i32) -> (i32, i32) {
    %c0_i32 = arith.constant 0 : i32
    %c0_i32_0 = arith.constant 0 : i32
    %c0_i32_1 = arith.constant 0 : i32
    return %c0_i32, %c0_i32_0 : i32, i32
  }
}

</mosaic_0001>

<bundles_post_ra>
// kernel: scm_forward.1
= control target key start
LH: loop header
LB: loop body
LE: loop exit
PB: predicated region body
PF: predicated region fallthrough
CT: control target
= control target key end

     0   :  { %vm49_vm0 = vcmask 1045504   ;;  %vm83_vm1 = vcmask 1041408   ;;  %vm42_vm2 = vcmask 48128   ;;  %vm76_vm3 = vcmask 15360   ;;  %s300_s12 = smov 4   ;;  %s430_s3 = inlined_call_operand.vmem [shape: f32[152,64], index: 3, kind: input, shape index: {}]   ;;  %s431_s0 = inlined_call_operand.vmem [shape: f32[16,6], index: 0, kind: input, shape index: {}]   ;;  %s432_s1 = inlined_call_operand.vmem [shape: f32[16,2], index: 1, kind: input, shape index: {}]   ;;  %s433_s4 = inlined_call_operand.vmem [shape: f32[16,6], index: 4, kind: output, shape index: {}]   ;;  %s434_s2 = inlined_call_operand.vmem [shape: f32[16,4], index: 2, kind: input, shape index: {}]  }
   0x1   :  { %v22_v0 = vld [vmem:[%s430_s3 + $0x8] sm:$0x3f]  ;;  %v21_v1 = vld [vmem:[%s430_s3] sm:$0x3]  ;;  %v33_v5 = vld [vmem:[%s430_s3 + $0x50] sm:$0xff]  ;;  %vm116_vm4 = vcmask 523264  }
   0x2   :  { %v17_v2 = vld [vmem:[%s431_s0] sm:$0xff]  ;;  %253 = vmatpush.msk.msra.mxu0 %vm49_vm0, %v22_v0  ;;  %256 = vmatpush.msk.msra.mxu1 %vm83_vm1, %v21_v1  ;;  %v18_v4 = vld [vmem:[%s431_s0 + $0x8] sm:$0xff]  ;;  %v30_v9 = vld [vmem:[%s430_s3 + $0x38] sm:$0xff]  ;;  %vm246_vm9 = vcmask 48144  }
   0x3   :  { %v19_v3 = vld [vmem:[%s432_s1] sm:$0xff]  ;;  %236 = vst.msk [vmem:[%s433_s4] sm:$0xff] %vm76_vm3, %v17_v2  ;;  %254 = vmatmul.msk.f32.vlgmr.msra.gmra.mxu0 %vm42_vm2, %v17_v2  ;;  %v32_v6 = vld [vmem:[%s430_s3 + $0x48] sm:$0xff]  ;;  %263 = vmatpush.msra.mxu2 %v33_v5  ;;  %v29_v10 = vld [vmem:[%s430_s3 + $0x30] sm:$0xff] }
   0x4   :  { %257 = vmatmul.msk.f32.vlgmr.msra.gmra.mxu1 %vm76_vm3, %v19_v3  ;;  %237 = vst.msk [vmem:[%s433_s4 + $0x8] sm:$0xff] %vm76_vm3, %v18_v4  ;;  %131 = vmatpush.msrb.mxu0 %v33_v5  ;;  %v20_v7 = vld [vmem:[%s432_s1 + $0x8] sm:$0xff]  ;;  %v31_v8 = vld [vmem:[%s430_s3 + $0x40] sm:$0xff]  ;;  %v26_v13 = vld [vmem:[%s430_s3 + $0x18] sm:$0xff] }
   0x5   :  { %264 = vmatpush.msra.mxu2 %v32_v6  ;;  %v28_v11 = vld [vmem:[%s430_s3 + $0x28] sm:$0xff]  ;;  %v27_v12 = vld [vmem:[%s430_s3 + $0x20] sm:$0xff]  ;;  %v41_v14 = vld [vmem:[%s430_s3 + $0x90] sm:$0xff] }
   0x6   :  { %132 = vmatpush.msrb.mxu0 %v32_v6  ;;  %v40_v15 = vld [vmem:[%s430_s3 + $0x88] sm:$0xff]  ;;  %163 = vmatpush.msrb.mxu1 %v41_v14  ;;  %v39_v16 = vld [vmem:[%s430_s3 + $0x80] sm:$0xff]  ;;  %v281_v17 = vld [vmem:[%s430_s3 + $0x10] ss:$0 sm:$0xff] }
   0x7   :  { %265 = vmatpush.msra.mxu2 %v31_v8  ;;  %271 = vmatpush.msra.mxu3 %v41_v14  ;;  %v38_v28 = vld [vmem:[%s430_s3 + $0x78] sm:$0xff]  ;;  %v37_v29 = vld [vmem:[%s430_s3 + $0x70] sm:$0xff]  ;;  %v36_v30 = vld [vmem:[%s430_s3 + $0x68] sm:$0xff] }
   0x8   :  { %133 = vmatpush.msrb.mxu0 %v31_v8  ;;  %164 = vmatpush.msrb.mxu1 %v40_v15  ;;  %v35_v31 = vld [vmem:[%s430_s3 + $0x60] sm:$0xff]  ;;  %v34_v32 = vld [vmem:[%s430_s3 + $0x58] sm:$0xff]  ;;  %v282_v34 = vld [vmem:[%s430_s3 + $0x11] ss:$0 sm:$0xff] }
   0x9   :  { %266 = vmatpush.msra.mxu2 %v30_v9  ;;  %272 = vmatpush.msra.mxu3 %v40_v15  ;;  %v214_v33 = vld [vmem:[%s434_s2] sm:$0xff]  ;;  %v215_v35 = vld [vmem:[%s434_s2 + $0x8] sm:$0xff]  ;;  %v283_v42 = vld [vmem:[%s430_s3 + $0x12] ss:$0 sm:$0xff]  ;;  %s301_s2 = smov 126  }
   0xa   :  { %134 = vmatpush.msrb.mxu0 %v30_v9  ;;  %165 = vmatpush.msrb.mxu1 %v39_v16 }
   0xb   :  { %255 = vmatmul.msk.f32.gmra.mxu0 %vm42_vm2, %v18_v4  ;;  %267 = vmatpush.msra.mxu2 %v29_v10 }
   0xc   :  { %258 = vmatmul.msk.f32.gmra.mxu1 %vm76_vm3, %v20_v7  ;;  %135 = vmatpush.msrb.mxu0 %v29_v10 }
   0xd   :  { %268 = vmatpush.msra.mxu2 %v28_v11  ;;  %273 = vmatpush.msra.mxu3 %v39_v16 }
   0xe   :  { %136 = vmatpush.msrb.mxu0 %v28_v11  ;;  %166 = vmatpush.msrb.mxu1 %v38_v28 }
   0xf   :  { %269 = vmatpush.msra.mxu2 %v27_v12  ;;  %274 = vmatpush.msra.mxu3 %v38_v28 }
  0x10   :  { %137 = vmatpush.msrb.mxu0 %v27_v12  ;;  %167 = vmatpush.msrb.mxu1 %v37_v29 }
  0x11   :  { %270 = vmatpush.msra.mxu2 %v26_v13  ;;  %275 = vmatpush.msra.mxu3 %v37_v29 }
  0x12   :  { %138 = vmatpush.msrb.mxu0 %v26_v13  ;;  %168 = vmatpush.msrb.mxu1 %v36_v30 }
  0x13   :  { %276 = vmatpush.msra.mxu3 %v36_v30  ;;  %218 = vrot.lane.b32.xlu0 %v214_v33, %s300_s12 }
  0x14   :  { %169 = vmatpush.msrb.mxu1 %v35_v31 }
  0x15   :  { %277 = vmatpush.msra.mxu3 %v35_v31 }
  0x16   :  { %170 = vmatpush.msrb.mxu1 %v34_v32 }
  0x17   :  { %278 = vmatpush.msra.mxu3 %v34_v32 }
  0x1b   :  { %220 = vrot.lane.b32.xlu0 %v215_v35, %s300_s12 }
  0x80   :  { %v70_v18 = vpop.f32.mrf.mxu0 }
  0x81   :  { %v104_v19 = vpop.f32.mrf.mxu1 }
  0x82   :  { %v105_v20 = vadd.f32 %v104_v19, %v70_v18 }
  0x84   :  { %v111_v21 = vadd.f32 %v281_v17, %v105_v20 }
  0x85   :  { %v219_v2 = vpop.permute.xlu0 %218 }
  0x86   :  { %284 = vtanh.f32 %v111_v21 }
  0x88   :  { %v73_v22 = vpop.f32.mrf.mxu0 }
  0x89   :  { %v107_v23 = vpop.f32.mrf.mxu1 }
  0x8a   :  { %v108_v24 = vadd.f32 %v107_v23, %v73_v22 }
  0x8c   :  { %v285_v25 = vpop.eup %284  ;;  %v112_v26 = vadd.f32 %v281_v17, %v108_v24 }
  0x8d   :  { %259 = vmatmul.msk.f32.vlgmr.msrb.gmra.mxu0 %vm116_vm4, %v285_v25  ;;  %v221_v16 = vpop.permute.xlu0 %220 }
  0x8e   :  { %286 = vtanh.f32 %v112_v26 }
  0x94   :  { %v287_v27 = vpop.eup %286 }
  0x95   :  { %260 = vmatmul.msk.f32.vlgmr.msra.gmra.mxu2 %vm116_vm4, %v287_v27 }
 0x10a   :  { %v140_v36 = vpop.f32.mrf.mxu0 }
 0x10b   :  { %v141_v37 = vadd.f32 %v282_v34, %v140_v36 }
 0x10d   :  { %288 = vtanh.f32 %v141_v37 }
 0x113   :  { %v289_v38 = vpop.eup %288 }
 0x114   :  { %261 = vmatmul.msk.f32.vlgmr.msrb.gmra.mxu1 %vm116_vm4, %v289_v38 }
 0x118   :  { %v143_v39 = vpop.f32.mrf.mxu2 }
 0x119   :  { %v144_v40 = vadd.f32 %v282_v34, %v143_v39 }
 0x11b   :  { %290 = vtanh.f32 %v144_v40 }
 0x121   :  { %v291_v41 = vpop.eup %290 }
 0x122   :  { %262 = vmatmul.msk.f32.vlgmr.msra.gmra.mxu3 %vm116_vm4, %v291_v41 }
 0x191   :  { %v172_v43 = vpop.f32.mrf.mxu1 }
 0x192   :  { %v173_v44 = vadd.f32 %v283_v42, %v172_v43 }
 0x194   :  { %228 = vrot.lane.b32.xlu1 %v173_v44, %s300_s12  ;;  %v184_v47 = vand.u32 2147483647, %v173_v44  ;;  %v178_v63 = vmax.f32 %v173_v44, 0.0  ;;  %vm180_vm6 = vcmp.ne.f32.partialorder %v173_v44, %v173_v44 }
 0x196   :  { %v186_v48 = vsub.f32 0.0, %v184_v47 }
 0x198   :  { %v188_v49 = vmul.f32 1.442695, %v186_v48 }
 0x19a   :  { %292 = vpow2.f32 %v188_v49 }
 0x1a0   :  { %v293_v50 = vpop.eup %292 }
 0x1a1   :  { %v192_v52 = vadd.f32 1.0, %v293_v50  ;;  %v195_v55 = vmul.f32 -0.5, %v293_v50  ;;  %v198_v58 = vand.u32 2147483647, %v293_v50 }
 0x1a3   :  { %294 = vlog2.f32 %v192_v52  ;;  %v196_v57 = vadd.f32 1.0, %v195_v55  ;;  %vm199_vm5 = vcmp.lt.f32.partialorder %v198_v58, 0.0004427343 }
 0x1a5   :  { %v175_v45 = vpop.f32.mrf.mxu3  ;;  %v197_v60 = vmul.f32 %v293_v50, %v196_v57 }
 0x1a6   :  { %v176_v46 = vadd.f32 %v283_v42, %v175_v45 }
 0x1a8   :  { %230 = vrot.lane.b32.xlu1 %v176_v46, %s300_s12  ;;  %v185_v51 = vand.u32 2147483647, %v176_v46  ;;  %v179_v14 = vmax.f32 %v176_v46, 0.0  ;;  %vm181_vm8 = vcmp.ne.f32.partialorder %v176_v46, %v176_v46 }
 0x1a9   :  { %v295_v56 = vpop.eup %294 }
 0x1aa   :  { %v187_v53 = vsub.f32 0.0, %v185_v51  ;;  %v194_v59 = vmul.f32 0.6931472, %v295_v56 }
 0x1ac   :  { %v190_v54 = vmul.f32 1.442695, %v187_v53  ;;  %v200_v62 = vsel %vm199_vm5, %v197_v60, %v194_v59 }
 0x1ad   :  { %v210_v0 = vadd.f32 %v200_v62, %v178_v63 }
 0x1ae   :  { %296 = vpow2.f32 %v190_v54 }
 0x1af   :  { %v212_v3 = vsel %vm180_vm6, %v173_v44, %v210_v0 }
 0x1b0   :  { %v224_v4 = vmul.f32 %v219_v2, %v212_v3 }
 0x1b4   :  { %v297_v61 = vpop.eup %296 }
 0x1b5   :  { %v201_v1 = vadd.f32 1.0, %v297_v61  ;;  %v204_v5 = vmul.f32 -0.5, %v297_v61  ;;  %v207_v10 = vand.u32 2147483647, %v297_v61 }
 0x1b7   :  { %298 = vlog2.f32 %v201_v1  ;;  %v205_v9 = vadd.f32 1.0, %v204_v5  ;;  %vm208_vm7 = vcmp.lt.f32.partialorder %v207_v10, 0.0004427343 }
 0x1b9   :  { %v206_v12 = vmul.f32 %v297_v61, %v205_v9 }
 0x1bd   :  { %v299_v8 = vpop.eup %298 }
 0x1be   :  { %v203_v11 = vmul.f32 0.6931472, %v299_v8 }
 0x1c0   :  { %v209_v13 = vsel %vm208_vm7, %v206_v12, %v203_v11 }
 0x1c1   :  { %v211_v15 = vadd.f32 %v209_v13, %v179_v14 }
 0x1c3   :  { %v213_v17 = vsel %vm181_vm8, %v176_v46, %v211_v15 }
 0x1c4   :  { %v225_v18 = vmul.f32 %v221_v16, %v213_v17 }
 0x206   :  { %v229_v6 = vpop.permute.xlu1 %228 }
 0x207   :  { %v234_v7 = vadd.f32 %v229_v6, %v224_v4 }
 0x209   :  { %240 = vrot.lane.b32.xlu2 %v234_v7, %s301_s2 }
 0x21a   :  { %v231_v19 = vpop.permute.xlu1 %230 }
 0x21b   :  { %v235_v20 = vadd.f32 %v231_v19, %v225_v18 }
 0x21d   :  { %242 = vrot.lane.b32.xlu2 %v235_v20, %s301_s2 }
 0x263   :  { %v241_v21 = vpop.permute.xlu2 %240 }
 0x264   :  { %247 = vst.msk [vmem:[%s433_s4] sm:$0xff] %vm246_vm9, %v241_v21 }
 0x277   :  { %v243_v22 = vpop.permute.xlu2 %242 }
 0x278   :  { %248 = vst.msk [vmem:[%s433_s4 + $0x8] sm:$0xff] %vm246_vm9, %v243_v22 }

</bundles_post_ra>
